<compile_context>
chip_gen: v7x
topology: tpu7x:2x2x1
jax: 0.10.0
libtpu: 0.0.40
codegen_flags: <defaults>
</compile_context>

<pallas_src>
import functools

import jax
import jax.numpy as jnp
from jax.experimental import pallas as pl
from jax.experimental.pallas import tpu as pltpu


def _gaussianize_kernel(patch_ref, x2_ref, w_ref, b_ref, z2_ref, ld_ref, *,
                        Ch, Bt):
    """Fused Gaussianize for Bt batch elements (grid over batch tiles).

    patch_ref: (Bt, 9*Ch, H*W)  im2col'ed x1 (contraction dim order ci,kh,kw)
    x2_ref   : (Bt, Ch, H*W)    x2 in (channel, flat-spatial) layout
    w_ref    : (2*Ch, 9*Ch)     conv weight * exp(lsf), rows = [m..., logs...]
    b_ref    : (2*Ch, 1)        conv bias * exp(lsf),   rows = [m..., logs...]
    z2_ref   : (Bt, Ch, H*W)    output z2 (lane-dense along H*W)
    ld_ref   : (Bt, 1, 1)       output logdet per batch element
    """
    w = w_ref[...]
    b = b_ref[...]
    for bi in range(Bt):  # small static unroll
        # One MXU matmul: (2Ch, 9Ch) @ (9Ch, H*W) -> (2Ch, H*W); H*W on lanes.
        h = jnp.dot(w, patch_ref[bi], preferred_element_type=jnp.float32) + b
        m = h[:Ch, :]
        logs = h[Ch:, :]
        z2_ref[bi] = (x2_ref[bi] - m) * jnp.exp(-logs)
        ld_ref[bi] = -jnp.sum(logs, axis=(0, 1), keepdims=True)


def _pick_batch_tile(B):
    # Keep >= 2 grid blocks (two v7x TensorCores) while amortizing the
    # per-grid-step overhead; cap the tile to bound kernel unrolling.
    for bt in (8, 4, 2):
        if bt <= B // 2 and B % bt == 0:
            return bt
    return 1


def split_forward(x, weight, bias, log_scale_factor):
    """Split.forward.

    x: dict with key 'melspec' -> (B, C, H, W) float32 (or the array itself).
    weight: (C, C//2, 3, 3)  Gaussianize conv weight (Cout = 2*(C//2) = C).
    bias: (C,)               Gaussianize conv bias.
    log_scale_factor: (C, 1, 1)
    Returns (x1, z2, logdet) in PyTorch layouts: (B,C/2,H,W), (B,C/2,H,W), (B,).
    """
    if isinstance(x, dict):
        x = x["melspec"]
    x = x.astype(jnp.float32)
    B, C, H, W = x.shape
    assert C % 2 == 0, "Split assumes an even channel count (chunk(2, dim=1))"
    Ch = C // 2
    Cout = 2 * Ch
    HW = H * W
    K9 = 9 * Ch

    x1 = x[:, :Ch]                                    # (B, Ch, H, W) passthrough
    x2f = x[:, Ch:].reshape(B, Ch, HW)                # contiguous (free) reshape

    # im2col packed in the wrapper (tiny; kills all in-kernel relayouts).
    x1p = jnp.pad(x1, ((0, 0), (0, 0), (1, 1), (1, 1)))          # (B,Ch,H+2,W+2)
    taps = [x1p[:, :, kh:kh + H, kw:kw + W]
            for kh in range(3) for kw in range(3)]
    patch = jnp.stack(taps, axis=2).reshape(B, K9, HW)           # (B, 9*Ch, H*W)

    # Fold exp(log_scale_factor) into weight & bias (exact); permute output
    # channels to [even (m)..., odd (logs)...] so m / logs are contiguous.
    s = jnp.exp(log_scale_factor.astype(jnp.float32)).reshape(Cout)
    wf = weight.astype(jnp.float32) * s[:, None, None, None]
    bf = bias.astype(jnp.float32) * s
    perm = jnp.concatenate([jnp.arange(0, Cout, 2), jnp.arange(1, Cout, 2)])
    w2 = wf.reshape(Cout, K9)[perm]                   # (Cout, 9*Ch) [m..., logs...]
    b2 = bf[perm].reshape(Cout, 1)                    # (Cout, 1)

    Bt = _pick_batch_tile(B)
    kernel = functools.partial(_gaussianize_kernel, Ch=Ch, Bt=Bt)

    z2f, ld = pl.pallas_call(
        kernel,
        grid=(B // Bt,),
        in_specs=[
            pl.BlockSpec((Bt, K9, HW), lambda i: (i, 0, 0)),
            pl.BlockSpec((Bt, Ch, HW), lambda i: (i, 0, 0)),
            pl.BlockSpec((Cout, K9), lambda i: (0, 0)),
            pl.BlockSpec((Cout, 1), lambda i: (0, 0)),
        ],
        out_specs=[
            pl.BlockSpec((Bt, Ch, HW), lambda i: (i, 0, 0)),
            pl.BlockSpec((Bt, 1, 1), lambda i: (i, 0, 0)),
        ],
        out_shape=[
            jax.ShapeDtypeStruct((B, Ch, HW), jnp.float32),
            jax.ShapeDtypeStruct((B, 1, 1), jnp.float32),
        ],
        compiler_params=pltpu.CompilerParams(
            dimension_semantics=("parallel",),        # batch tiles on both TCs
            vmem_limit_bytes=16 * 1024 * 1024,        # blocks are only ~100s KB
        ),
    )(patch, x2f, w2, b2)

    z2 = z2f.reshape(B, Ch, H, W)                     # contiguous (free) reshape
    logdet = ld.reshape(B)
    return x1, z2, logdet


if __name__ == "__main__":
    key = jax.random.PRNGKey(0)
    B, C, H, W = 2, 8, 16, 16       # melspec (B, C, H, W); Split chunks C in two
    Ch = C // 2
    Cout = 2 * Ch

    k1, k2, k3, k4 = jax.random.split(key, 4)
    mel = jax.random.normal(k1, (B, C, H, W), jnp.float32)
    # The module zero-initializes net.weight / net.bias / log_scale_factor
    # (identity Gaussianization); use small random values so the conv path is
    # actually exercised.
    weight = 0.1 * jax.random.normal(k2, (Cout, Ch, 3, 3), jnp.float32)
    bias = 0.1 * jax.random.normal(k3, (Cout,), jnp.float32)
    log_scale_factor = 0.1 * jax.random.normal(k4, (Cout, 1, 1), jnp.float32)

    fwd = jax.jit(split_forward)
    x1, z2, logdet = fwd({"melspec": mel}, weight, bias, log_scale_factor)
    jax.block_until_ready((x1, z2, logdet))

    # Pure-JAX reference of the same forward (lax.conv) for a correctness check.
    h_ref = jax.lax.conv_general_dilated(
        mel[:, :Ch], weight, window_strides=(1, 1), padding=((1, 1), (1, 1)),
        dimension_numbers=("NCHW", "OIHW", "NCHW"),
        precision=jax.lax.Precision.HIGHEST)
    h_ref = (h_ref + bias[None, :, None, None]) * jnp.exp(log_scale_factor)[None]
    m_ref, logs_ref = h_ref[:, 0::2], h_ref[:, 1::2]
    z2_ref = (mel[:, Ch:] - m_ref) * jnp.exp(-logs_ref)
    ld_ref = -jnp.sum(logs_ref, axis=(1, 2, 3))

    assert x1.shape == (B, Ch, H, W)
    assert z2.shape == (B, Ch, H, W)
    assert logdet.shape == (B,)
    assert bool(jnp.allclose(x1, mel[:, :Ch]))
    assert bool(jnp.allclose(z2, z2_ref, atol=2e-3, rtol=2e-3))
    assert bool(jnp.allclose(logdet, ld_ref, atol=2e-3, rtol=2e-3))
    print("KERNEL_OK")
</pallas_src>

<mosaic_0001>
module attributes {stable_mosaic.version = 11 : i64} {
  func.func @_gaussianize_kernel(%arg0: i32, %arg1: memref<1x36x256xf32, #tpu.memory_space<vmem>>, %arg2: memref<1x4x256xf32, #tpu.memory_space<vmem>>, %arg3: memref<8x36xf32, #tpu.memory_space<vmem>>, %arg4: memref<8x1xf32, #tpu.memory_space<vmem>>, %arg5: memref<1x4x256xf32, #tpu.memory_space<vmem>>, %arg6: memref<1x1x1xf32, #tpu.memory_space<vmem>>) attributes {dimension_semantics = [#tpu.dimension_semantics<parallel>], iteration_bounds = array<i64: 2>, scalar_prefetch = 0 : i64, scratch_operands = 0 : i64, tpu.core_type = #tpu.core_type<tc>, window_params = [{transform_indices = @transform_0, window_bounds = array<i64: 1, 36, 256>}, {transform_indices = @transform_1, window_bounds = array<i64: 1, 4, 256>}, {pipeline_mode = #tpu.pipeline_mode<synchronous>, transform_indices = @transform_2, window_bounds = array<i64: 8, 36>}, {pipeline_mode = #tpu.pipeline_mode<synchronous>, transform_indices = @transform_3, window_bounds = array<i64: 8, 1>}, {transform_indices = @transform_4, window_bounds = array<i64: 1, 4, 256>}, {transform_indices = @transform_5, window_bounds = array<i64: 1, 1, 1>}]} {
    %c0 = arith.constant 0 : index
    %c0_0 = arith.constant 0 : index
    %0 = vector.load %arg3[%c0, %c0_0] : memref<8x36xf32, #tpu.memory_space<vmem>>, vector<8x36xf32>
    %c0_1 = arith.constant 0 : index
    %c0_2 = arith.constant 0 : index
    %1 = vector.load %arg4[%c0_1, %c0_2] : memref<8x1xf32, #tpu.memory_space<vmem>>, vector<8x1xf32>
    %c0_3 = arith.constant 0 : index
    %c0_4 = arith.constant 0 : index
    %c0_5 = arith.constant 0 : index
    %2 = vector.load %arg1[%c0_3, %c0_4, %c0_5] : memref<1x36x256xf32, #tpu.memory_space<vmem>>, vector<1x36x256xf32>
    %3 = vector.shape_cast %2 : vector<1x36x256xf32> to vector<36x256xf32>
    %cst = arith.constant dense<0.000000e+00> : vector<8x256xf32>
    %4 = tpu.matmul %0, %3, %cst {dimension_numbers = #tpu.dot_dimension_numbers<[1], [0], [0], [1], [0, 0, 1, 1], [], []>} : vector<8x36xf32>, vector<36x256xf32>, vector<8x256xf32> -> vector<8x256xf32>
    %5 = vector.broadcast %1 : vector<8x1xf32> to vector<8x256xf32>
    %6 = arith.addf %4, %5 : vector<8x256xf32>
    %7 = vector.extract_strided_slice %6 {offsets = [0, 0], sizes = [4, 256], strides = [1, 1]} : vector<8x256xf32> to vector<4x256xf32>
    %8 = vector.extract_strided_slice %6 {offsets = [4, 0], sizes = [4, 256], strides = [1, 1]} : vector<8x256xf32> to vector<4x256xf32>
    %c0_6 = arith.constant 0 : index
    %c0_7 = arith.constant 0 : index
    %c0_8 = arith.constant 0 : index
    %9 = vector.load %arg2[%c0_6, %c0_7, %c0_8] : memref<1x4x256xf32, #tpu.memory_space<vmem>>, vector<1x4x256xf32>
    %10 = vector.shape_cast %9 : vector<1x4x256xf32> to vector<4x256xf32>
    %11 = arith.subf %10, %7 : vector<4x256xf32>
    %cst_9 = arith.constant 0.000000e+00 : f32
    %12 = vector.broadcast %cst_9 : f32 to vector<4x256xf32>
    %13 = arith.subf %12, %8 : vector<4x256xf32>
    %14 = math.exp %13 : vector<4x256xf32>
    %15 = arith.mulf %11, %14 : vector<4x256xf32>
    %c0_10 = arith.constant 0 : index
    %c0_11 = arith.constant 0 : index
    %c0_12 = arith.constant 0 : index
    %16 = vector.load %arg5[%c0_10, %c0_11, %c0_12] : memref<1x4x256xf32, #tpu.memory_space<vmem>>, vector<1x4x256xf32>
    %17 = vector.shape_cast %16 : vector<1x4x256xf32> to vector<4x256xf32>
    %18 = vector.shape_cast %15 : vector<4x256xf32> to vector<1x4x256xf32>
    tpu.vector_store %arg5[%c0_10, %c0_11, %c0_12], %18 {strides = array<i32>} : memref<1x4x256xf32, #tpu.memory_space<vmem>>, vector<1x4x256xf32>,
    %19 = vector.shape_cast %8 : vector<4x256xf32> to vector<1x4x256xf32>
    %cst_13 = arith.constant dense<0.000000e+00> : vector<1xf32>
    %20 = vector.multi_reduction <add>, %19, %cst_13 [1, 2] : vector<1x4x256xf32> to vector<1xf32>
    %21 = vector.shape_cast %20 : vector<1xf32> to vector<1x1x1xf32>
    %22 = vector.extract %21[0, 0, 0] : f32 from vector<1x1x1xf32>
    %23 = vector.broadcast %22 : f32 to vector<1x1xf32>
    %cst_14 = arith.constant 0.000000e+00 : f32
    %24 = vector.broadcast %cst_14 : f32 to vector<1x1xf32>
    %25 = arith.subf %24, %23 : vector<1x1xf32>
    %c0_15 = arith.constant 0 : index
    %c0_16 = arith.constant 0 : index
    %c0_17 = arith.constant 0 : index
    %26 = vector.load %arg6[%c0_15, %c0_16, %c0_17] : memref<1x1x1xf32, #tpu.memory_space<vmem>>, vector<1x1x1xf32>
    %27 = vector.shape_cast %26 : vector<1x1x1xf32> to vector<1x1xf32>
    %28 = vector.shape_cast %25 : vector<1x1xf32> to vector<1x1x1xf32>
    tpu.vector_store %arg6[%c0_15, %c0_16, %c0_17], %28 {strides = array<i32>} : memref<1x1x1xf32, #tpu.memory_space<vmem>>, vector<1x1x1xf32>,
    return
  }
  func.func @transform_0(%arg0: i32) -> (i32, i32, i32) {
    %c0_i32 = arith.constant 0 : i32
    %c0_i32_0 = arith.constant 0 : i32
    %c0_i32_1 = arith.constant 0 : i32
    return %arg0, %c0_i32, %c0_i32_0 : i32, i32, i32
  }
  func.func @transform_1(%arg0: i32) -> (i32, i32, i32) {
    %c0_i32 = arith.constant 0 : i32
    %c0_i32_0 = arith.constant 0 : i32
    %c0_i32_1 = arith.constant 0 : i32
    return %arg0, %c0_i32, %c0_i32_0 : i32, i32, i32
  }
  func.func @transform_2(%arg0: i32) -> (i32, i32) {
    %c0_i32 = arith.constant 0 : i32
    %c0_i32_0 = arith.constant 0 : i32
    %c0_i32_1 = arith.constant 0 : i32
    return %c0_i32, %c0_i32_0 : i32, i32
  }
  func.func @transform_3(%arg0: i32) -> (i32, i32) {
    %c0_i32 = arith.constant 0 : i32
    %c0_i32_0 = arith.constant 0 : i32
    %c0_i32_1 = arith.constant 0 : i32
    return %c0_i32, %c0_i32_0 : i32, i32
  }
  func.func @transform_4(%arg0: i32) -> (i32, i32, i32) {
    %c0_i32 = arith.constant 0 : i32
    %c0_i32_0 = arith.constant 0 : i32
    %c0_i32_1 = arith.constant 0 : i32
    return %arg0, %c0_i32, %c0_i32_0 : i32, i32, i32
  }
  func.func @transform_5(%arg0: i32) -> (i32, i32, i32) {
    %c0_i32 = arith.constant 0 : i32
    %c0_i32_0 = arith.constant 0 : i32
    %c0_i32_1 = arith.constant 0 : i32
    return %arg0, %c0_i32, %c0_i32_0 : i32, i32, i32
  }
}

</mosaic_0001>

<bundles_post_ra>
// kernel: split_forward.1
= control target key start
LH: loop header
LB: loop body
LE: loop exit
PB: predicated region body
PF: predicated region fallthrough
CT: control target
= control target key end

     0   :  { %s566_s18 = smov 0   ;;  %s604_s0 = inlined_call_operand.vmem [shape: f32[2,36,256], index: 0, kind: input, shape index: {}]   ;;  %s605_s1 = inlined_call_operand.vmem [shape: f32[2,4,256], index: 1, kind: input, shape index: {}]   ;;  %s606_s2 = inlined_call_operand.vmem [shape: f32[8,36], index: 2, kind: input, shape index: {}]   ;;  %s607_s3 = inlined_call_operand.vmem [shape: f32[8,1], index: 3, kind: input, shape index: {}]   ;;  %s608_s4 = inlined_call_operand.vmem [shape: f32[2,4,256], index: 4, kind: output, shape index: {0}]   ;;  %s609_s5 = inlined_call_operand.vmem [shape: f32[2,1,1], index: 5, kind: output, shape index: {1}]  }
   0x1 LB: > { %s483_s19 = sadd.s32 4294967295, %s532_s18   ;;  %p487_p0 = scmp.ge.s32.totalorder %s532_s18, 1  ;;  %s532_s18 = sphi %s566_s18, %s16_s18  }
   0x2   : > { %p200_p1 = scmp.lt.s32.totalorder %s532_s18, 3 }
   0x4   : > { %p201_p2 = pnand %p487_p0, %p200_p1 }
   0x5   : > { %p236_p3 = scmp.lt.s32.totalorder (!%p201_p2), %s483_s19, 1  ;;  %v534_v0 = vmov (!%p201_p2), 0.0   ;;  %v535_v1 = vmov (!%p201_p2), 0   ;;  %v255_v2 = vld [vmem:[%s607_s3] sm:$0xff] (!%p201_p2)  ;;  %vm275_vm0 = vcmask (!%p201_p2), 1043456   ;;  %vm271_vm1 = vcmask (!%p201_p2), 293888  }
   0x6   : > { %204 = sbr.rel (%p201_p2) target bundleno = 458 (0x1ca), region = 36  ;;  %346 = vmatprep.mubr.f32.mxu0 (!%p201_p2), %v534_v0  ;;  %521 = vset.pattern.permute.xlu0 (!%p201_p2), %v535_v1  ;;  %v254_v17 = vld [vmem:[%s606_s2] sm:$0xff] (!%p201_p2)  ;;  %vm389_vm2 = vcmask (!%p201_p2), 0  }
   0x7   : > { %268 = vperm.xlu0 (!%p201_p2), %521, %v255_v2  }
   0xd   : > { %s611_s19 = smov (!%p236_p3, %s483_s19), 1 }
   0xe   : > { %s508_s22 = smul.u32 80, %s611_s19  ;;  %s498_s28 = sshll.u32 %s611_s19, 3 }
   0xf   : > { %s245_s6 = scalar_lea.vmem %s605_s1, %s498_s28  ;;  %s250_s9 = scalar_lea.vmem %s608_s4, %s498_s28 }
  0x10   : > { %s240_s25 = scalar_lea.vmem %s604_s0, %s508_s22  ;;  %v353_v33 = vld [vmem:[%s245_s6] sm:$0xff]  ;;  %s253_s13 = scalar_lea.vmem %s609_s5, %s611_s19 }
  0x11   : > { %v257_v3 = vld [vmem:[%s240_s25 + $0x8] sm:$0xff]  ;;  %v259_v4 = vld [vmem:[%s240_s25 + $0x18] sm:$0xff]  ;;  %v256_v5 = vld [vmem:[%s240_s25] sm:$0xff] }
  0x12   : > { %v500_v6 = vpack.c.bf16 %v259_v4, %v257_v3  ;;  %v258_v7 = vld [vmem:[%s240_s25 + $0x10] sm:$0xff]  ;;  %v261_v8 = vld [vmem:[%s240_s25 + $0x28] sm:$0xff]  ;;  %v263_v9 = vld [vmem:[%s240_s25 + $0x38] sm:$0xff] }
  0x13   : > { %v502_v10 = vpack.c.bf16 %v258_v7, %v256_v5  ;;  %v504_v11 = vpack.c.bf16 %v263_v9, %v261_v8  ;;  %v260_v12 = vld [vmem:[%s240_s25 + $0x20] sm:$0xff]  ;;  %v262_v13 = vld [vmem:[%s240_s25 + $0x30] sm:$0xff]  ;;  %v265_v15 = vld [vmem:[%s240_s25 + $0x48] sm:$0xf] }
  0x14   : > { %501 = vmatprep.subr.bf16.mxu0 %v500_v6  ;;  %v506_v14 = vpack.c.bf16 %v262_v13, %v260_v12  ;;  %v264_v16 = vld [vmem:[%s240_s25 + $0x40] sm:$0xf] }
  0x15   : > { %503 = vmatpush1.bf16.msra.mxu0 %v502_v10 }
  0x16   : > { %505 = vmatprep.subr.bf16.mxu0 %v504_v11 }
  0x19   : > { %507 = vmatpush1.bf16.msra.mxu0 %v506_v14 }
  0x1a   : > { %493 = vmatprep.subr.msk.mxu0 %vm275_vm0, %v265_v15 }
  0x1d   : > { %494 = vmatpush1.msk.msra.mxu0 %vm275_vm0, %v264_v16 }
  0x1e   : > { %495 = vmatmul.mubr.msk.f32.vlgmr.msra.gmra.mrb[0].mxu0 %vm271_vm1, %v254_v17 }
  0x86   : > { %v269_v18 = vpop.permute.xlu0 %268 }
  0xf1   : > { %v348_v19 = vpop.f32.mrb[0].mxu0 }
  0xf2   : > { %v349_v20 = vadd.f32 %v348_v19, %v269_v18  ;;  %v350_v21 = vpop.f32.mrb[1].mxu0 }
  0xf3   : > { %v351_v22 = vadd.f32 %v350_v21, %v269_v18 }
  0xf4   : > { %v359_v23 = vsub.f32 0.0, %v349_v20  ;;  %v371_v24 = vrot.slane %v349_v20, 4 }
  0xf5   : > { %v356_v25 = vcombine.low %v349_v20, %v351_v22  ;;  %v360_v26 = vsub.f32 0.0, %v351_v22  ;;  %v372_v27 = vrot.slane %v351_v22, 4 }
  0xf6   : > { %v361_v28 = vmul.f32 1.442695, %v359_v23  ;;  %v375_v29 = vsel %vm275_vm0, %v371_v24, 0.0 }
  0xf7   : > { %v363_v30 = vmul.f32 1.442695, %v360_v26  ;;  %v376_v31 = vsel %vm275_vm0, %v372_v27, 0.0  ;;  %v358_v36 = vsub.f32 %v353_v33, %v356_v25 }
  0xf8   : > { %522 = vpow2.f32 %v361_v28  ;;  %v377_v32 = vadd.f32 %v376_v31, %v375_v29 }
  0xf9   : > { %524 = vpow2.f32 %v363_v30 }
  0xfa   : > { %378 = vadd.xlane.f32.xlu0 %v377_v32 }
 0x102   : > { %v523_v34 = vpop.eup %522 }
 0x103   : > { %v525_v35 = vpop.eup %524 }
 0x104   : > { %v367_v37 = vcombine.high %v523_v34, %v525_v35 }
 0x106   : > { %v369_v38 = vmul.f32 %v367_v37, %v358_v36 }
 0x108   : > { %370 = vst [vmem:[%s250_s9] sm:$0xff] %v369_v38 }
 0x187   : > { %v379_v39 = vpop.xlane.xlu0 %378 }
 0x188   : > { %v380_v40 = vrot.slane %v379_v39, 4 }
 0x18a   : > { %v381_v41 = vadd.f32 %v380_v40, %v379_v39 }
 0x18c   : > { %v382_v42 = vrot.slane %v381_v41, 2 }
 0x18e   : > { %v383_v43 = vadd.f32 %v382_v42, %v381_v41 }
 0x190   : > { %v384_v44 = vrot.slane %v383_v43, 1 }
 0x192   : > { %v385_v45 = vadd.f32 %v384_v44, %v383_v43 }
 0x194   : > { %509 = vpush %v385_v45 }
 0x1c5   : > { %s510_s10 = spop %509 }
 0x1c6   : > { %v387_v46 = vstv %s510_s10 }
 0x1c7   : > { %v388_v47 = vsub.f32 0.0, %v387_v46 }
 0x1c9   : > { %390 = vst.msk [vmem:[%s253_s13] sm:$0x1] %vm389_vm2, %v388_v47 }
 0x1ca PF: > { %s16_s18 = sadd.s32 1, %s532_s18  }
 0x1cb   : > { %p13_p4 = scmp.ge.s32.totalorder %s16_s18, 4  }
 0x1cd   :  { %15 = sbr.rel (!%p13_p4) target bundleno = 1 (0x1), region = 81 }

</bundles_post_ra>
